<compile_context>
chip_gen: v7x
topology: tpu7x:2x2x1
jax: 0.10.0
libtpu: 0.0.40
codegen_flags: <defaults>
</compile_context>

<pallas_src>
import functools
import math

import jax
import jax.numpy as jnp
from jax import lax
from jax.experimental import pallas as pl
from jax.experimental.pallas import tpu as pltpu


# --------------------------------------------------------------------------------------
# Kernel 1: fused per-head QKV projection (T-tiled, resident weights).
# --------------------------------------------------------------------------------------
def qkv_proj_kernel(x_ref, w_ref, b_ref, q_ref, k_ref, v_ref, *, head_dim, scale):
    """Grid step = (b, t_tile, h). Computes q,k,v for one head / one T tile."""
    h = pl.program_id(2)
    x = x_ref[0]                                             # (tm, C)   bf16 (wrapper cast)
    w = w_ref[h]                                             # (C, 3D)   bf16, resident
    qkv = jnp.dot(x, w, preferred_element_type=jnp.float32) + b_ref[h]   # (tm, 3D) f32
    d = head_dim
    # Fold the 1/sqrt(head_dim) softmax scale into q once (T*D muls instead of T*T per head).
    # TODO(synk): head-grouped weight packing so q/k/v column slices land on 128-lane
    #             boundaries (better MXU N-fill on v6e/v7x when 3D < 256).
    q_ref[0, 0] = (qkv[:, :d] * scale).astype(q_ref.dtype)
    k_ref[0, 0] = qkv[:, d:2 * d].astype(k_ref.dtype)
    v_ref[0, 0] = qkv[:, 2 * d:].astype(v_ref.dtype)


# --------------------------------------------------------------------------------------
# Kernel 2: flash attention with resident K/V and an in-kernel causal kv loop.
# --------------------------------------------------------------------------------------
def flash_attn_kernel(q_ref, k_ref, v_ref, o_ref, *, blk):
    """Grid = (b, h, q_block). K/V blocks are the full sequence for this (b, h)."""
    qi = pl.program_id(2)
    q = q_ref[0, 0]                                          # (blk, D)  bf16, pre-scaled
    d = q.shape[-1]

    # Hoisted local causal mask; only the diagonal kv block (j == qi) is partial.
    row = lax.broadcasted_iota(jnp.int32, (blk, blk), 0)
    col = lax.broadcasted_iota(jnp.int32, (blk, blk), 1)
    diag_mask = row >= col

    def body(j, carry):
        m_prev, l_prev, acc_prev = carry
        start = pl.multiple_of(j * blk, blk)
        k_t = k_ref[0, 0, pl.ds(start, blk), :]              # (blk, D) bf16, from VMEM
        v_t = v_ref[0, 0, pl.ds(start, blk), :]
        # Contract over the shared last dim: no explicit k.T / XLU transpose.
        s = lax.dot_general(q, k_t, (((1,), (1,)), ((), ())),
                            preferred_element_type=jnp.float32)          # (blk, blk) f32
        s = jnp.where(diag_mask | (j != qi), s, -1e30)       # mask bites only when j == qi

        # Online softmax update; statistics stay in float32 (v5e-safe).
        m_new = jnp.maximum(m_prev, jnp.max(s, axis=-1, keepdims=True))
        alpha = jnp.exp(m_prev - m_new)
        p = jnp.exp(s - m_new)
        l_new = alpha * l_prev + jnp.sum(p, axis=-1, keepdims=True)
        acc_new = alpha * acc_prev + jnp.dot(p.astype(v_t.dtype), v_t,
                                             preferred_element_type=jnp.float32)
        return m_new, l_new, acc_new

    m0 = jnp.full((blk, 1), -jnp.inf, jnp.float32)
    l0 = jnp.zeros((blk, 1), jnp.float32)
    a0 = jnp.zeros((blk, d), jnp.float32)
    # Dynamic trip count qi + 1: upper-triangular kv blocks are never touched at all.
    m, l, acc = lax.fori_loop(0, qi + 1, body, (m0, l0, a0))

    inv_l = pl.reciprocal(l, approx=True)                    # EUP slot, off the VPU divide path
    o_ref[0, 0] = (acc * inv_l).astype(o_ref.dtype)


# --------------------------------------------------------------------------------------
# Kernel 3: output projection — one full-depth (tm, C) @ (C, C) matmul per tile.
# --------------------------------------------------------------------------------------
def out_proj_kernel(y_ref, wp_ref, bp_ref, o_ref):
    """Grid = (b, t_tile). wp is VMEM-resident; no accumulator scratch needed."""
    o_ref[0] = (jnp.dot(y_ref[0], wp_ref[...], preferred_element_type=jnp.float32)
                + bp_ref[...]).astype(o_ref.dtype)


# --------------------------------------------------------------------------------------
# Wrapper
# --------------------------------------------------------------------------------------
def _vmem_limit(single_buffer_bytes):
    """Double-buffered pipeline footprint + slack, clamped to v7x's 64 MiB physical VMEM."""
    return int(min(max(2 * single_buffer_bytes + (4 << 20), 16 << 20), 64 << 20))


def _pick_tile(t, candidates):
    for cand in candidates:
        if t % cand == 0:
            return cand
    return t


def causal_self_attention(x, params, *, n_head):
    """params: wq,bq,wk,bk,wv,bv,wp,bp with w* shaped (C_in, C_out), b* shaped (1, C)."""
    B, T, C = x.shape
    H = n_head
    assert C % H == 0
    D = C // H

    # Projection T tile and flash q/kv tile.  blk = 128 matches the v5e MXU; K/V are
    # VMEM-resident so larger blk is not needed for arithmetic intensity (256 can be
    # used on v6e/v7x if vreg pressure allows).
    tm = _pick_tile(T, (256, 128))
    blk = _pick_tile(T, (128,))
    nq = T // blk

    # --- parameter re-layout (host-side plumbing, cast to bf16 once) ---
    def per_head_w(w):   # (C_in, C_out) -> (H, C_in, D)
        return w.reshape(C, H, D).transpose(1, 0, 2)

    def per_head_b(b):   # (1, C) -> (H, 1, D)
        return b.reshape(1, H, D).transpose(1, 0, 2)

    w_qkv = jnp.concatenate(
        [per_head_w(params["wq"]), per_head_w(params["wk"]), per_head_w(params["wv"])],
        axis=-1).astype(jnp.bfloat16)                        # (H, C, 3D) bf16
    b_qkv = jnp.concatenate(
        [per_head_b(params["bq"]), per_head_b(params["bk"]), per_head_b(params["bv"])],
        axis=-1)                                             # (H, 1, 3D) f32
    wp = params["wp"].astype(jnp.bfloat16)                   # (C, C) bf16
    bp = params["bp"]                                        # (1, C) f32
    x_bf = x.astype(jnp.bfloat16)                            # halve kernel-1 HBM reads

    # --- 1) fused per-head QKV projection ---
    qkv_bytes = (tm * C * 2) + (H * C * 3 * D * 2) + (H * 3 * D * 4) + 3 * (tm * D * 2)
    qkv_out_spec = pl.BlockSpec((1, 1, tm, D), lambda b, ti, h: (b, h, ti, 0))
    q, k, v = pl.pallas_call(
        functools.partial(qkv_proj_kernel, head_dim=D, scale=1.0 / math.sqrt(D)),
        out_shape=tuple(jax.ShapeDtypeStruct((B, H, T, D), jnp.bfloat16) for _ in range(3)),
        grid=(B, T // tm, H),
        in_specs=[pl.BlockSpec((1, tm, C), lambda b, ti, h: (b, ti, 0)),
                  pl.BlockSpec((H, C, 3 * D), lambda b, ti, h: (0, 0, 0)),   # resident
                  pl.BlockSpec((H, 1, 3 * D), lambda b, ti, h: (0, 0, 0))],  # resident
        out_specs=(qkv_out_spec, qkv_out_spec, qkv_out_spec),
        compiler_params=pltpu.CompilerParams(
            dimension_semantics=("parallel", "parallel", "parallel"),
            vmem_limit_bytes=_vmem_limit(qkv_bytes)),
    )(x_bf, w_qkv, b_qkv)

    # --- 2) flash attention: K/V resident per (b, h), causal kv loop inside kernel ---
    attn_bytes = 2 * (blk * D * 2) + 2 * (T * D * 2)
    y = pl.pallas_call(
        functools.partial(flash_attn_kernel, blk=blk),
        out_shape=jax.ShapeDtypeStruct((B, H, T, D), jnp.bfloat16),
        grid=(B, H, nq),
        in_specs=[pl.BlockSpec((1, 1, blk, D), lambda b, h, qi: (b, h, qi, 0)),
                  pl.BlockSpec((1, 1, T, D), lambda b, h, qi: (b, h, 0, 0)),   # K resident
                  pl.BlockSpec((1, 1, T, D), lambda b, h, qi: (b, h, 0, 0))],  # V resident
        out_specs=pl.BlockSpec((1, 1, blk, D), lambda b, h, qi: (b, h, qi, 0)),
        compiler_params=pltpu.CompilerParams(
            dimension_semantics=("parallel", "parallel", "parallel"),
            vmem_limit_bytes=_vmem_limit(attn_bytes)),
    )(q, k, v)

    # --- 3) output projection: one cheap XLA relayout, then full-depth matmul per tile ---
    y_t = y.transpose(0, 2, 1, 3).reshape(B, T, C)           # (B, T, C) bf16
    proj_bytes = (tm * C * 2) + (C * C * 2) + (C * 4) + (tm * C * x.dtype.itemsize)
    out = pl.pallas_call(
        out_proj_kernel,
        out_shape=jax.ShapeDtypeStruct((B, T, C), x.dtype),
        grid=(B, T // tm),
        in_specs=[pl.BlockSpec((1, tm, C), lambda b, ti: (b, ti, 0)),
                  pl.BlockSpec((C, C), lambda b, ti: (0, 0)),        # resident
                  pl.BlockSpec((1, C), lambda b, ti: (0, 0))],       # resident
        out_specs=pl.BlockSpec((1, tm, C), lambda b, ti: (b, ti, 0)),
        compiler_params=pltpu.CompilerParams(
            dimension_semantics=("parallel", "parallel"),
            vmem_limit_bytes=_vmem_limit(proj_bytes)),
    )(y_t, wp, bp)

    return out


# --------------------------------------------------------------------------------------
# Pure-JAX reference (mirrors the PyTorch forward, dropout = identity), and init.
# --------------------------------------------------------------------------------------
def reference_attention(x, params, *, n_head):
    B, T, C = x.shape
    D = C // n_head
    q = x @ params["wq"] + params["bq"][0]
    k = x @ params["wk"] + params["bk"][0]
    v = x @ params["wv"] + params["bv"][0]
    q = q.reshape(B, T, n_head, D).transpose(0, 2, 1, 3)
    k = k.reshape(B, T, n_head, D).transpose(0, 2, 1, 3)
    v = v.reshape(B, T, n_head, D).transpose(0, 2, 1, 3)
    att = (q @ jnp.swapaxes(k, -2, -1)) / math.sqrt(D)
    mask = jnp.tril(jnp.ones((T, T), dtype=bool))
    att = jnp.where(mask[None, None], att, -jnp.inf)
    att = jax.nn.softmax(att, axis=-1)
    y = att @ v
    y = y.transpose(0, 2, 1, 3).reshape(B, T, C)
    return y @ params["wp"] + params["bp"][0]


def init_params(key, n_embd):
    """nn.Linear-style U(-1/sqrt(fan_in), 1/sqrt(fan_in)); weights stored as (C_in, C_out)."""
    k = 1.0 / math.sqrt(n_embd)
    keys = jax.random.split(key, 8)

    def u(kk, shape):
        return jax.random.uniform(kk, shape, jnp.float32, minval=-k, maxval=k)

    return {
        "wq": u(keys[0], (n_embd, n_embd)), "bq": u(keys[1], (1, n_embd)),
        "wk": u(keys[2], (n_embd, n_embd)), "bk": u(keys[3], (1, n_embd)),
        "wv": u(keys[4], (n_embd, n_embd)), "bv": u(keys[5], (1, n_embd)),
        "wp": u(keys[6], (n_embd, n_embd)), "bp": u(keys[7], (1, n_embd)),
    }


def _run_case(B, T, C, H, key):
    kx, kp = jax.random.split(key)
    x = jax.random.normal(kx, (B, T, C), dtype=jnp.float32)
    params = init_params(kp, C)
    out = jax.block_until_ready(causal_self_attention(x, params, n_head=H))
    ref = reference_attention(x, params, n_head=H)
    assert out.shape == (B, T, C)
    # bf16 MXU operands + approx reciprocal => slightly looser tolerance than pure f32.
    assert jnp.allclose(out, ref, atol=2e-2, rtol=2e-2), (
        f"mismatch at B={B} T={T} C={C} H={H}: max abs err "
        f"{float(jnp.max(jnp.abs(out - ref)))}")


if __name__ == "__main__":
    root = jax.random.PRNGKey(0)
    k1, k2 = jax.random.split(root)
    # Small config: batch=2, seq=8, n_embd=32, n_head=4 (head_dim=8).
    _run_case(2, 8, 32, 4, k1)
    # Larger config exercising 128-wide flash tiles, the in-kernel causal kv loop
    # (1 and 2 iterations), diagonal-block masking and 256-wide projection tiles.
    _run_case(2, 256, 128, 4, k2)
    print("KERNEL_OK")
</pallas_src>

<mosaic_0001>
module attributes {stable_mosaic.version = 11 : i64} {
  func.func @qkv_proj_kernel(%arg0: i32, %arg1: i32, %arg2: i32, %arg3: memref<1x8x32xbf16, #tpu.memory_space<vmem>>, %arg4: memref<4x32x24xbf16, #tpu.memory_space<vmem>>, %arg5: memref<4x1x24xf32, #tpu.memory_space<vmem>>, %arg6: memref<1x1x8x8xbf16, #tpu.memory_space<vmem>>, %arg7: memref<1x1x8x8xbf16, #tpu.memory_space<vmem>>, %arg8: memref<1x1x8x8xbf16, #tpu.memory_space<vmem>>) attributes {dimension_semantics = [#tpu.dimension_semantics<parallel>, #tpu.dimension_semantics<parallel>, #tpu.dimension_semantics<parallel>], iteration_bounds = array<i64: 2, 1, 4>, scalar_prefetch = 0 : i64, scratch_operands = 0 : i64, tpu.core_type = #tpu.core_type<tc>, window_params = [{transform_indices = @transform_0, window_bounds = array<i64: 1, 8, 32>}, {pipeline_mode = #tpu.pipeline_mode<synchronous>, transform_indices = @transform_1, window_bounds = array<i64: 4, 32, 24>}, {pipeline_mode = #tpu.pipeline_mode<synchronous>, transform_indices = @transform_2, window_bounds = array<i64: 4, 1, 24>}, {transform_indices = @transform_3, window_bounds = array<i64: 1, 1, 8, 8>}, {transform_indices = @transform_4, window_bounds = array<i64: 1, 1, 8, 8>}, {transform_indices = @transform_5, window_bounds = array<i64: 1, 1, 8, 8>}]} {
    %c0 = arith.constant 0 : index
    %c0_0 = arith.constant 0 : index
    %c0_1 = arith.constant 0 : index
    %0 = vector.load %arg3[%c0, %c0_0, %c0_1] : memref<1x8x32xbf16, #tpu.memory_space<vmem>>, vector<1x8x32xbf16>
    %1 = vector.shape_cast %0 : vector<1x8x32xbf16> to vector<8x32xbf16>
    %2 = arith.index_cast %arg2 : i32 to index
    %c0_2 = arith.constant 0 : index
    %c0_3 = arith.constant 0 : index
    %3 = vector.load %arg4[%2, %c0_2, %c0_3] : memref<4x32x24xbf16, #tpu.memory_space<vmem>>, vector<1x32x24xbf16>
    %4 = vector.shape_cast %3 : vector<1x32x24xbf16> to vector<32x24xbf16>
    %cst = arith.constant dense<0.000000e+00> : vector<8x24xf32>
    %5 = tpu.matmul %1, %4, %cst {dimension_numbers = #tpu.dot_dimension_numbers<[1], [0], [0], [1], [0, 0, 1, 1], [], []>} : vector<8x32xbf16>, vector<32x24xbf16>, vector<8x24xf32> -> vector<8x24xf32>
    %6 = arith.index_cast %arg2 : i32 to index
    %c0_4 = arith.constant 0 : index
    %c0_5 = arith.constant 0 : index
    %7 = vector.load %arg5[%6, %c0_4, %c0_5] : memref<4x1x24xf32, #tpu.memory_space<vmem>>, vector<1x1x24xf32>
    %8 = vector.shape_cast %7 : vector<1x1x24xf32> to vector<1x24xf32>
    %9 = vector.broadcast %8 : vector<1x24xf32> to vector<8x24xf32>
    %10 = arith.addf %5, %9 : vector<8x24xf32>
    %11 = vector.extract_strided_slice %10 {offsets = [0, 0], sizes = [8, 8], strides = [1, 1]} : vector<8x24xf32> to vector<8x8xf32>
    %cst_6 = arith.constant 0.353553385 : f32
    %12 = vector.broadcast %cst_6 : f32 to vector<8x8xf32>
    %13 = arith.mulf %11, %12 : vector<8x8xf32>
    %14 = arith.truncf %13 : vector<8x8xf32> to vector<8x8xbf16>
    %c0_7 = arith.constant 0 : index
    %c0_8 = arith.constant 0 : index
    %c0_9 = arith.constant 0 : index
    %c0_10 = arith.constant 0 : index
    %15 = vector.load %arg6[%c0_7, %c0_8, %c0_9, %c0_10] : memref<1x1x8x8xbf16, #tpu.memory_space<vmem>>, vector<1x1x8x8xbf16>
    %16 = vector.shape_cast %15 : vector<1x1x8x8xbf16> to vector<8x8xbf16>
    %17 = vector.shape_cast %14 : vector<8x8xbf16> to vector<1x1x8x8xbf16>
    tpu.vector_store %arg6[%c0_7, %c0_8, %c0_9, %c0_10], %17 {strides = array<i32>} : memref<1x1x8x8xbf16, #tpu.memory_space<vmem>>, vector<1x1x8x8xbf16>,
    %18 = vector.extract_strided_slice %10 {offsets = [0, 8], sizes = [8, 8], strides = [1, 1]} : vector<8x24xf32> to vector<8x8xf32>
    %19 = arith.truncf %18 : vector<8x8xf32> to vector<8x8xbf16>
    %c0_11 = arith.constant 0 : index
    %c0_12 = arith.constant 0 : index
    %c0_13 = arith.constant 0 : index
    %c0_14 = arith.constant 0 : index
    %20 = vector.load %arg7[%c0_11, %c0_12, %c0_13, %c0_14] : memref<1x1x8x8xbf16, #tpu.memory_space<vmem>>, vector<1x1x8x8xbf16>
    %21 = vector.shape_cast %20 : vector<1x1x8x8xbf16> to vector<8x8xbf16>
    %22 = vector.shape_cast %19 : vector<8x8xbf16> to vector<1x1x8x8xbf16>
    tpu.vector_store %arg7[%c0_11, %c0_12, %c0_13, %c0_14], %22 {strides = array<i32>} : memref<1x1x8x8xbf16, #tpu.memory_space<vmem>>, vector<1x1x8x8xbf16>,
    %23 = vector.extract_strided_slice %10 {offsets = [0, 16], sizes = [8, 8], strides = [1, 1]} : vector<8x24xf32> to vector<8x8xf32>
    %24 = arith.truncf %23 : vector<8x8xf32> to vector<8x8xbf16>
    %c0_15 = arith.constant 0 : index
    %c0_16 = arith.constant 0 : index
    %c0_17 = arith.constant 0 : index
    %c0_18 = arith.constant 0 : index
    %25 = vector.load %arg8[%c0_15, %c0_16, %c0_17, %c0_18] : memref<1x1x8x8xbf16, #tpu.memory_space<vmem>>, vector<1x1x8x8xbf16>
    %26 = vector.shape_cast %25 : vector<1x1x8x8xbf16> to vector<8x8xbf16>
    %27 = vector.shape_cast %24 : vector<8x8xbf16> to vector<1x1x8x8xbf16>
    tpu.vector_store %arg8[%c0_15, %c0_16, %c0_17, %c0_18], %27 {strides = array<i32>} : memref<1x1x8x8xbf16, #tpu.memory_space<vmem>>, vector<1x1x8x8xbf16>,
    return
  }
  func.func @transform_0(%arg0: i32, %arg1: i32, %arg2: i32) -> (i32, i32, i32) {
    %c0_i32 = arith.constant 0 : i32
    %c0_i32_0 = arith.constant 0 : i32
    return %arg0, %arg1, %c0_i32 : i32, i32, i32
  }
  func.func @transform_1(%arg0: i32, %arg1: i32, %arg2: i32) -> (i32, i32, i32) {
    %c0_i32 = arith.constant 0 : i32
    %c0_i32_0 = arith.constant 0 : i32
    %c0_i32_1 = arith.constant 0 : i32
    %c0_i32_2 = arith.constant 0 : i32
    return %c0_i32, %c0_i32_0, %c0_i32_1 : i32, i32, i32
  }
  func.func @transform_2(%arg0: i32, %arg1: i32, %arg2: i32) -> (i32, i32, i32) {
    %c0_i32 = arith.constant 0 : i32
    %c0_i32_0 = arith.constant 0 : i32
    %c0_i32_1 = arith.constant 0 : i32
    %c0_i32_2 = arith.constant 0 : i32
    return %c0_i32, %c0_i32_0, %c0_i32_1 : i32, i32, i32
  }
  func.func @transform_3(%arg0: i32, %arg1: i32, %arg2: i32) -> (i32, i32, i32, i32) {
    %c0_i32 = arith.constant 0 : i32
    %c0_i32_0 = arith.constant 0 : i32
    return %arg0, %arg2, %arg1, %c0_i32 : i32, i32, i32, i32
  }
  func.func @transform_4(%arg0: i32, %arg1: i32, %arg2: i32) -> (i32, i32, i32, i32) {
    %c0_i32 = arith.constant 0 : i32
    %c0_i32_0 = arith.constant 0 : i32
    return %arg0, %arg2, %arg1, %c0_i32 : i32, i32, i32, i32
  }
  func.func @transform_5(%arg0: i32, %arg1: i32, %arg2: i32) -> (i32, i32, i32, i32) {
    %c0_i32 = arith.constant 0 : i32
    %c0_i32_0 = arith.constant 0 : i32
    return %arg0, %arg2, %arg1, %c0_i32 : i32, i32, i32, i32
  }
}

</mosaic_0001>

<bundles_post_ra>
// kernel: tpu_custom_call.1
= control target key start
LH: loop header
LB: loop body
LE: loop exit
PB: predicated region body
PF: predicated region fallthrough
CT: control target
= control target key end

     0   :  { %11 = vsyncpa [#allocation3], 0  ;;  %s1131_s0 = inlined_call_operand.vmem [shape: bf16[2,8,32], index: 0, kind: input, shape index: {}]   ;;  %s1132_s1 = inlined_call_operand.vmem [shape: bf16[4,32,24], index: 1, kind: input, shape index: {}]   ;;  %s1133_s2 = inlined_call_operand.vmem [shape: f32[4,1,24], index: 2, kind: input, shape index: {}]   ;;  %s1134_s3 = inlined_call_operand.hbm [shape: bf16[2,4,8,8], index: 3, kind: output, shape index: {0}]   ;;  %s1135_s4 = inlined_call_operand.hbm [shape: bf16[2,4,8,8], index: 4, kind: output, shape index: {1}]   ;;  %s1136_s5 = inlined_call_operand.hbm [shape: bf16[2,4,8,8], index: 5, kind: output, shape index: {2}]  }
   0x1   :  { %13 = vsyncpa [#allocation3 + $0x1], 0 }
   0x2   :  { %14 = vsyncpa [#allocation5], 0 }
   0x3   :  { %16 = vsyncpa [#allocation5 + $0x1], 0  ;;  %s897_s18 = smov 0   ;;  %s899_s19 = smov 0  }
   0x4   :  { %s901_s20 = smov 0   ;;  %s903_s21 = smov 0  }
   0x5   :  { %s905_s22 = smov 0   ;;  %s907_s23 = smov 0  }
   0x6   :  { %s909_s24 = smov 0   ;;  %s911_s25 = smov 0  }
   0x7 LB: > { %s1138_s26 = sadd.s32 4294967295, %s858_s25   ;;  %s1137_s27 = sadd.s32 4294967294, %s858_s25   ;;  %s858_s25 = sphi %s911_s25, %s22_s25   ;;  %s854_s24 = sphi %s909_s24, %s1153_s24   ;;  %s850_s23 = sphi %s907_s23, %s1152_s23   ;;  %s846_s22 = sphi %s905_s22, %s1151_s22   ;;  %s842_s21 = sphi %s903_s21, %s1150_s21   ;;  %s838_s20 = sphi %s901_s20, %s1149_s20   ;;  %s834_s19 = sphi %s899_s19, %s1148_s19   ;;  %s830_s18 = sphi %s897_s18, %s1147_s18  }
   0x8   : > { %s34_s28 = sadd.s32 1, %s850_s23  ;;  %s41_s29 = sadd.s32 1, %s854_s24 }
   0x9   : > { %p35_p0 = scmp.ge.s32.totalorder %s34_s28, 4  ;;  %p132_p1 = scmp.ne.s32.totalorder %s838_s20, %s834_s19 }
   0xa   : > { %p133_p2 = scmp.eq.s32.totalorder %s1138_s26, 7  ;;  %p138_p5 = scmp.ne.s32.totalorder %s834_s19, %s830_s18 }
   0xb   : > { %s1155_s28 = smov (%p35_p0, %s34_s28), 0  ;;  %s1157_s29 = smov (!%p35_p0, %s41_s29), %s854_s24 }
   0xc   : > { %s116_s30 = ssub.s32 %s850_s23, %s1155_s28  ;;  %p950_p3 = por %p133_p2, %p132_p1 }
   0xd   : > { %p43_p4 = scmp.ge.s32.totalorder %s1157_s29, 2  ;;  %p139_p6 = scmp.eq.s32.totalorder %s1137_s27, 7 }
   0xe   : > { %p581_p7 = scmp.ge.s32.totalorder %s858_s25, 1  ;;  %p233_p9 = scmp.lt.s32.totalorder %s858_s25, 9 }
   0xf   : > { %s1159_s29 = smov (%p43_p4, %s1157_s29), 0  ;;  %p961_p8 = por %p139_p6, %p138_p5 }
  0x10   : > { %s115_s8 = ssub.s32 %s854_s24, %s1159_s29  ;;  %s122_s9 = sadd.s32 1, %s838_s20 }
  0x11   : > { %s117_s10 = sor.u32 %s116_s30, %s115_s8  ;;  %p234_p10 = pnand %p581_p7, %p233_p9 }
  0x12   : > { %p120_p11 = scmp.eq.s32.totalorder %s117_s10, 0  ;;  %s604_s12 = sshll.u32 (!%p234_p10), %s842_s21, 4  ;;  %v860_v0 = vmov (!%p234_p10), 0.0   ;;  %vm861_vm0 = vmmov (!%p234_p10), 0   ;;  %vm309_vm1 = vcmask (!%p234_p10), 261120   ;;  %vm355_vm2 = vcmask (!%p234_p10), 60416  }
  0x13   : > { %237 = sbr.rel (%p234_p10) target bundleno = 401 (0x191), region = 32  ;;  %p273_p12 = scmp.lt.s32.totalorder (!%p234_p10), %s846_s22, 1  ;;  %609 = vmatprep.subr.bf16.mxu0 (!%p234_p10), %v860_v0  ;;  %613 = vmatprep.mubr.msk.bf16.mxu0 (!%p234_p10), %vm861_vm0, %v860_v0 }
  0x14   : > { %s970_s11 = scalar_select %p120_p11, %s838_s20, %s122_s9  }
  0x15   : > { %s284_s15 = scalar_lea.vmem (!%p234_p10), %s1132_s1, %s604_s12  ;;  %s289_s13 = scalar_lea.vmem (!%p234_p10), %s1133_s2, %s842_s21 }
  0x16   : > { %v702_v1 = vld [vmem:[%s284_s15] sm:$0xff] (!%p234_p10)   ;;  %v703_v2 = vld [vmem:[%s284_s15 + $0x8] sm:$0xff] (!%p234_p10)   ;;  %s256_s14 = sand.u32 (!%p234_p10), 1, %s834_s19   ;;  %s596_s27 = sshll.u32 (!%p234_p10), %s846_s22, 2 }
  0x17   : > { %610 = vmatpush3.bf16.msra.mxu0 (!%p234_p10), %v702_v1  ;;  %v588_v4 = vld [vmem:[%s289_s13] ss:$0 sm:$0xff] (!%p234_p10)  ;;  %s987_s26 = sshll.u32 (!%p234_p10), %s256_s14, 2  ;;  %s392_s15 = sadd.s32 (!%p234_p10), %s842_s21, %s596_s27 }
  0x18   : > { %611 = vmatprep.subr.bf16.mxu0 (!%p234_p10), %v860_v0  ;;  %s370_s27 = scalar_lea.sflag (!%p234_p10), [#allocation3], %s256_s14  ;;  %s863_s12 = smov (!%p234_p10), [#allocation2]  }
  0x19   : > { %s708_s13 = sshll.u32 (!%p234_p10), %s863_s12, 4  ;;  %s709_s13 = int_to_ptr.vmem [resolvable:$false] %s708_s13 }
  0x1a   : > { %s274_s16 = scalar_select %p273_p12, %s846_s22, 1 }
  0x1b   : > { %612 = vmatpush3.bf16.msra.mxu0 %v703_v2  ;;  %s862_s22 = smov 120  }
  0x1c   : > { %s585_s17 = sshll.u32 %s274_s16, 2  ;;  %s990_s16 = sshll.u32 %s392_s15, 6 }
  0x1d   : > { %s279_s9 = scalar_lea.vmem %s1131_s0, %s585_s17  ;;  %s258_s17 = scalar_lea.vmem [#allocation2], %s987_s26 }
  0x1e   : > { %v281_v3 = vld [vmem:[%s279_s9] sm:$0xf]  ;;  %s396_s30 = sshll.u32 %s258_s17, 4  ;;  %s997_s21 = scalar_lea.hbm %s1134_s3, %s990_s16  ;;  %s999_s30 = int_to_ptr.vmem [resolvable:$true] %s396_s30 }
  0x1f   : > { %614 = vmatmul.mubr.msk.bf16.vlgmr.msra.gmra.mrb[0].mxu0 %vm309_vm1, %v281_v3  ;;  %s704_s10 = scalar_lea.vmem %s999_s30, 64  ;;  %s710_s15 = scalar_lea.vmem %s709_s13, 128 }
  0x20   : > { %p705_p13 = scmp.ne.s32.totalorder %s999_s30, %s704_s10  ;;  %p711_p2 = scmp.lt.s32.totalorder %s999_s30, %s709_s13 }
  0x21   : > { %p712_p4 = scmp.lt.s32.totalorder %s710_s15, %s704_s10 }
  0x22   : > { %p706_p0 = pnand %p705_p13, %p950_p3 }
  0x23   : > { %p713_p5 = por %p712_p4, %p711_p2 }
  0x24   : > { %p707_p1 = pneg %p706_p0 }
  0x26   : > { %p714_p6 = pnand %p713_p5, %p707_p1 }
  0xf2   : > { %v347_v5 = vpop.f32.mrb[0].mxu0 }
  0xf3   : > { %v348_v6 = vadd.f32 %v588_v4, %v347_v5  ;;  %v615_v7 = vpop.f32.mrb[1].mxu0 }
  0xf4   : > { %v350_v8 = vpop.f32.mrb[2].mxu0 }
  0xf5   : > { %v353_v9 = vmul.f32 0.35355338, %v348_v6  ;;  %v616_v10 = vpop.f32.mrb[3].mxu0  ;;  %v605_v11 = vpack.c.bf16 %v348_v6, %v348_v6 }
  0xf7   : > { %v354_v12 = vpack.c.bf16 %v353_v9, %v353_v9  ;;  %361 = vrot.lane.b32.xlu0 %v605_v11, %s862_s22 }
  0xf9   : > { %356 = vst.msk [vmem:[%s258_s17] sm:$0xf] %vm355_vm2, %v354_v12 }
  0xfa   : > { %717 = shalt.err (!%p714_p6)
}
  0xfb   : > { %s718_s14 = scalar_lea.hbm %s997_s21, 64  ;;  %s722_s8 = scalar_lea.hbm %s1134_s3, 512 }
  0xfc   : > { %p719_p7 = scmp.ne.s32.totalorder %s997_s21, %s718_s14  ;;  %p723_p11 = scmp.lt.u32.totalorder %s997_s21, %s1134_s3 }
  0xfd   : > { %p724_p12 = scmp.lt.u32.totalorder %s722_s8, %s718_s14  ;;  %p726_p0 = scmp.lt.u32.totalorder %s718_s14, %s997_s21 }
  0xfe   : > { %p720_p9 = pnand %p719_p7, %p950_p3 }
  0xff   : > { %p725_p13 = por %p724_p12, %p723_p11 }
 0x100   : > { %p721_p10 = pneg %p720_p9 }
 0x101   : > { %p727_p1 = por %p726_p0, %p725_p13 }
 0x103   : > { %p728_p2 = pnand %p727_p1, %p721_p10 }
 0x105   : > { %731 = shalt.err (!%p728_p2)
}
 0x106   : > { %617 = dma.vmem_to_hbm [thread:$0]  (%p950_p3), %s999_s30, 64, %s997_s21, %s370_s27  }
 0x107   : > { %s864_s10 = smov 112   ;;  %s1142_s13 = sadd.s32 4294967295, %s858_s25  }
 0x108   : > { %365 = vrot.lane.b32.xlu0 %v605_v11, %s864_s10  ;;  %s1025_s15 = sand.u32 1, %s1142_s13   ;;  %s265_s14 = scalar_lea.vmem [#allocation4], %s987_s26 }
 0x109   : > { %s412_s17 = sshll.u32 %s265_s14, 4  ;;  %s1032_s9 = scalar_lea.hbm %s1135_s4, %s990_s16  ;;  %s1034_s17 = int_to_ptr.vmem [resolvable:$true] %s412_s17 }
 0x10a   : > { %s1139_s30 = scalar_lea.vmem [#allocation6], %s987_s26  ;;  %s732_s12 = scalar_lea.vmem %s1034_s17, 64 }
 0x10b   : > { %s1039_s21 = sshll.u32 %s1139_s30, 4  ;;  %p733_p4 = scmp.ne.s32.totalorder %s1034_s17, %s732_s12  ;;  %s1067_s21 = int_to_ptr.vmem [resolvable:$true] %s1039_s21 }
 0x10c   : > { %s865_s10 = smov [#allocation4]  }
 0x10d   : > { %p734_p5 = pnand %p733_p4, %p950_p3  ;;  %s736_s13 = sshll.u32 %s865_s10, 4  ;;  %s737_s13 = int_to_ptr.vmem [resolvable:$false] %s736_s13 }
 0x10e   : > { %s738_s22 = scalar_lea.vmem %s737_s13, 128  ;;  %p739_p7 = scmp.lt.s32.totalorder %s1034_s17, %s737_s13 }
 0x10f   : > { %p735_p6 = pneg %p734_p5  ;;  %p740_p9 = scmp.lt.s32.totalorder %s738_s22, %s732_s12 }
 0x111   : > { %p741_p10 = por %p740_p9, %p739_p7 }
 0x113   : > { %p742_p11 = pnand %p741_p10, %p735_p6 }
 0x169   : > { %v362_v13 = vpop.permute.xlu0 %361 }
 0x16a   : > { %364 = vst.msk [vmem:[%s265_s14] sm:$0xf] %vm355_vm2, %v362_v13 }
 0x16b   : > { %745 = shalt.err (!%p742_p11)
}
 0x16c   : > { %s746_s14 = scalar_lea.hbm %s1032_s9, 64  ;;  %s750_s10 = scalar_lea.hbm %s1135_s4, 512 }
 0x16d   : > { %p747_p12 = scmp.ne.s32.totalorder %s1032_s9, %s746_s14  ;;  %p751_p1 = scmp.lt.u32.totalorder %s1032_s9, %s1135_s4 }
 0x16e   : > { %p752_p2 = scmp.lt.u32.totalorder %s750_s10, %s746_s14  ;;  %p754_p5 = scmp.lt.u32.totalorder %s746_s14, %s1032_s9 }
 0x16f   : > { %p748_p13 = pnand %p747_p12, %p950_p3 }
 0x170   : > { %p753_p4 = por %p752_p2, %p751_p1 }
 0x171   : > { %p749_p0 = pneg %p748_p13 }
 0x172   : > { %p755_p6 = por %p754_p5, %p753_p4 }
 0x174   : > { %p756_p7 = pnand %p755_p6, %p749_p0 }
 0x176   : > { %759 = shalt.err (!%p756_p7)
}
 0x177   : > { %s1143_s12 = scalar_lea.sflag [#allocation5], %s1025_s15  ;;  %s1073_s22 = scalar_lea.hbm %s1136_s5, %s990_s16 }
 0x178   : > { %618 = dma.vmem_to_hbm [thread:$0]  (%p950_p3), %s1034_s17, 64, %s1032_s9, %s1143_s12  }
 0x179   : > { %s1144_s14 = scalar_lea.vmem [#allocation6], %s987_s26  ;;  %s760_s8 = scalar_lea.vmem %s1067_s21, 64 }
 0x17a   : > { %v366_v14 = vpop.permute.xlu0 %365  ;;  %p761_p9 = scmp.ne.s32.totalorder %s1067_s21, %s760_s8  ;;  %s866_s17 = smov [#allocation6]  }
 0x17b   : > { %368 = vst.msk [vmem:[%s1144_s14] sm:$0xf] %vm355_vm2, %v366_v14  ;;  %s764_s9 = sshll.u32 %s866_s17, 4  ;;  %s765_s9 = int_to_ptr.vmem [resolvable:$false] %s764_s9 }
 0x17c   : > { %p762_p10 = pnand %p761_p9, %p950_p3  ;;  %s766_s10 = scalar_lea.vmem %s765_s9, 128 }
 0x17d   : > { %p767_p12 = scmp.lt.s32.totalorder %s1067_s21, %s765_s9  ;;  %p768_p13 = scmp.lt.s32.totalorder %s766_s10, %s760_s8 }
 0x17e   : > { %p763_p11 = pneg %p762_p10 }
 0x17f   : > { %p769_p0 = por %p768_p13, %p767_p12 }
 0x181   : > { %p770_p1 = pnand %p769_p0, %p763_p11 }
 0x183   : > { %773 = shalt.err (!%p770_p1)
}
 0x184   : > { %s774_s26 = scalar_lea.hbm %s1073_s22, 64  ;;  %s778_s12 = scalar_lea.hbm %s1136_s5, 512 }
 0x185   : > { %p775_p2 = scmp.ne.s32.totalorder %s1073_s22, %s774_s26  ;;  %p779_p6 = scmp.lt.u32.totalorder %s1073_s22, %s1136_s5 }
 0x186   : > { %p780_p7 = scmp.lt.u32.totalorder %s778_s12, %s774_s26  ;;  %p782_p10 = scmp.lt.u32.totalorder %s774_s26, %s1073_s22 }
 0x187   : > { %p776_p4 = pnand %p775_p2, %p950_p3 }
 0x188   : > { %p781_p9 = por %p780_p7, %p779_p6 }
 0x189   : > { %p777_p5 = pneg %p776_p4 }
 0x18a   : > { %p783_p11 = por %p782_p10, %p781_p9 }
 0x18c   : > { %p784_p12 = pnand %p783_p11, %p777_p5 }
 0x18e   : > { %787 = shalt.err (!%p784_p12)
}
 0x18f   : > { %s1145_s14 = scalar_lea.sflag [#allocation5], %s1025_s15 }
 0x190   : > { %619 = dma.vmem_to_hbm [thread:$0]  (%p950_p3), %s1067_s21, 64, %s1073_s22, %s1145_s14  }
 0x191 PF: > { %p633_p13 = scmp.ge.s32.totalorder %s858_s25, 2  ;;  %s440_s8 = sand.u32 1, %s830_s18  }
 0x192   : > { %s441_s17 = scalar_lea.sflag [#allocation3], %s440_s8 }
 0x193   : > { %p624_p0 = pnand %p633_p13, %p961_p8 }
 0x195   : > { %821 = dma.done.wait (!%p624_p0), %s441_s17, 64  }
 0x196   : > { %823 = vsyncadd (!%p624_p0), %s441_s17, 4294967232  ;;  %s1146_s9 = sadd.s32 4294967294, %s858_s25  }
 0x197   : > { %s449_s10 = sand.u32 1, %s1146_s9  }
 0x198   : > { %s450_s6 = scalar_lea.sflag [#allocation5], %s449_s10 }
 0x199   : > { %825 = dma.done.wait (!%p624_p0), %s450_s6, 128  }
 0x19a   : > { %827 = vsyncadd (!%p624_p0), %s450_s6, 4294967168  ;;  %s22_s25 = sadd.s32 1, %s858_s25   ;;  %s1147_s18 = smov %s834_s19 }
 0x19b   : > { %p19_p3 = scmp.ge.s32.totalorder %s22_s25, 10   ;;  %s1148_s19 = smov %s838_s20 }
 0x19c   : > { %s1149_s20 = smov %s970_s11  ;;  %s1150_s21 = smov %s850_s23 }
 0x19d   : > { %s1151_s22 = smov %s854_s24  ;;  %s1152_s23 = smov %s1155_s28 }
 0x19e   : > { %s1153_s24 = smov %s1159_s29  ;;  %21 = sbr.rel (!%p19_p3) target bundleno = 7 (0x7), region = 101 }
 0x1a5   :  { %464 = vsyncpa [#allocation3], 1 }
 0x1a6   :  { %466 = vsyncpa [#allocation3 + $0x1], 1 }
 0x1a7   :  { %467 = vsyncpa [#allocation5], 1 }
 0x1a8   :  { %469 = vsyncpa [#allocation5 + $0x1], 1 }

</bundles_post_ra>
